<compile_context>
chip_gen: v6e
topology: v6e:2x2x1
jax: 0.10.0
libtpu: 0.0.40
codegen_flags: <defaults>
</compile_context>

<pallas_src>
import functools

import jax
import jax.numpy as jnp
from jax.experimental import pallas as pl
from jax.experimental.pallas import tpu as pltpu


def mlr_kernel(params_ref, x_ref, o_ref):
    """params_ref: SMEM f32[4] = [w0, w1, w2, b]
       x_ref:      VMEM f32[3, R, 128]  (feature-major, sublane+lane dense)
       o_ref:      VMEM f32[R, 128]
    """
    # Pure VPU: SMEM scalars broadcast against full (R, 128) sublane-dense
    # planes -> every vld / VALU op / vst moves 1024 useful elements.
    y = (x_ref[0] * params_ref[0]
         + x_ref[1] * params_ref[1]
         + x_ref[2] * params_ref[2]
         + params_ref[3])
    o_ref[...] = y.astype(o_ref.dtype)


@functools.partial(jax.jit, static_argnames=("max_tile_b",))
def multivariable_linear_regression(x, w1, b1, w2, b2, max_tile_b=524288):
    """Forward pass of the PyTorch MultivariableLinearRegression module.

    x : (B, 3) float32
    w1: (3, 3), b1: (3,)   -- nn.Linear(3, 3) layout (out_features, in_features)
    w2: (1, 3), b2: (1,)   -- nn.Linear(1 <- 3) layout
    returns (B, 1) float32
    """
    B = x.shape[0]

    # --- Algebraic fusion of the two affine layers (once, outside the kernel).
    w_eff = (w1.T @ w2.T).reshape(3)            # (3,)
    b_eff = (b1 @ w2.T + b2).reshape(1)         # (1,)
    params = jnp.concatenate([w_eff, b_eff]).astype(jnp.float32)   # f32[4] -> SMEM

    # --- Tile sizing (batch elements).  tile_b must be a multiple of 1024 so
    # the (rows, 128) blocks are sublane-aligned (rows % 8 == 0).
    b_round = ((B + 1023) // 1024) * 1024
    n_tiles = pl.cdiv(b_round, max_tile_b)
    if b_round >= 2048 and n_tiles < 2:
        n_tiles = 2                              # keep both v7x TCs busy
    tile_b = ((pl.cdiv(b_round, n_tiles) + 1023) // 1024) * 1024
    b_pad = n_tiles * tile_b                     # pad <= one tile's worth
    rows_per_tile = tile_b // 128
    total_rows = b_pad // 128

    # Double-buffered VMEM: in 2*3*tile_b*4 + out 2*tile_b*4 = 32*tile_b bytes.
    # Default tile (512K) -> 16 MiB; cap keeps headroom on v7x's 64 MiB/TC.
    vmem_limit = min(48 << 20, max(32 << 20, 40 * tile_b))

    # --- Lane+sublane dense layout: feature-major, batch split (rows, 128).
    xT = x.T if x.dtype == jnp.float32 else x.T.astype(jnp.float32)
    xT = jnp.pad(xT, ((0, 0), (0, b_pad - B)))           # fuses with transpose
    x3 = xT.reshape(3, total_rows, 128)                   # free view

    out = pl.pallas_call(
        mlr_kernel,
        out_shape=jax.ShapeDtypeStruct((total_rows, 128), jnp.float32),
        grid_spec=pltpu.PrefetchScalarGridSpec(
            num_scalar_prefetch=0,
            grid=(n_tiles,),
            in_specs=[
                # 4 fused parameters: tiny SMEM-resident array, no per-step DMA.
                pl.BlockSpec(memory_space=pltpu.MemorySpace.SMEM),
                # x streamed feature-major, sublane+lane dense, double-buffered.
                pl.BlockSpec((3, rows_per_tile, 128), lambda i: (0, i, 0)),
            ],
            out_specs=pl.BlockSpec((rows_per_tile, 128), lambda i: (i, 0)),
        ),
        compiler_params=pltpu.CompilerParams(
            # Batch axis is embarrassingly parallel -> shards across 2 TCs on v7x.
            dimension_semantics=("parallel",),
            vmem_limit_bytes=vmem_limit,
        ),
    )(params, x3)

    # (total_rows, 128) is row-major contiguous over the batch -> flatten, trim pad.
    return out.reshape(b_pad)[:B].reshape(B, 1)


if __name__ == "__main__":
    key = jax.random.PRNGKey(0)
    k_x, k_w1, k_b1, k_w2, k_b2 = jax.random.split(key, 5)

    bound = 1.0 / jnp.sqrt(3.0)
    # PyTorch nn.Linear layout: weight (out_features, in_features), bias (out_features,)
    w1 = jax.random.uniform(k_w1, (3, 3), jnp.float32, -bound, bound)
    b1 = jax.random.uniform(k_b1, (3,), jnp.float32, -bound, bound)
    w2 = jax.random.uniform(k_w2, (1, 3), jnp.float32, -bound, bound)
    b2 = jax.random.uniform(k_b2, (1,), jnp.float32, -bound, bound)

    ok = True
    for B in (8, 5000):   # 8: single-tile path; 5000: multi-tile / megacore path
        x = jax.random.normal(jax.random.fold_in(k_x, B), (B, 3), jnp.float32)
        out = multivariable_linear_regression(x, w1, b1, w2, b2)
        jax.block_until_ready(out)

        # Reference: the exact (un-fused) PyTorch forward in plain JAX.
        ref = (x @ w1.T + b1) @ w2.T + b2
        ok &= out.shape == (B, 1)
        ok &= bool(jnp.allclose(out, ref, atol=1e-5, rtol=1e-5))

    assert ok
    print("KERNEL_OK")
</pallas_src>

<mosaic_0001>
module attributes {stable_mosaic.version = 11 : i64} {
  func.func @mlr_kernel(%arg0: i32, %arg1: memref<4xf32, #tpu.memory_space<smem>>, %arg2: memref<3x8x128xf32, #tpu.memory_space<vmem>>, %arg3: memref<8x128xf32, #tpu.memory_space<vmem>>) attributes {dimension_semantics = [#tpu.dimension_semantics<parallel>], iteration_bounds = array<i64: 1>, scalar_prefetch = 0 : i64, scratch_operands = 0 : i64, tpu.core_type = #tpu.core_type<tc>, window_params = [{transform_indices = @transform_0, window_bounds = array<i64: 4>}, {transform_indices = @transform_1, window_bounds = array<i64: 3, 8, 128>}, {transform_indices = @transform_2, window_bounds = array<i64: 8, 128>}]} {
    %c0 = arith.constant 0 : index
    %c0_0 = arith.constant 0 : index
    %c0_1 = arith.constant 0 : index
    %0 = vector.load %arg2[%c0, %c0_0, %c0_1] : memref<3x8x128xf32, #tpu.memory_space<vmem>>, vector<1x8x128xf32>
    %1 = vector.shape_cast %0 : vector<1x8x128xf32> to vector<8x128xf32>
    %c0_2 = arith.constant 0 : index
    %2 = memref.load %arg1[%c0_2] : memref<4xf32, #tpu.memory_space<smem>>
    %3 = vector.broadcast %2 : f32 to vector<8x128xf32>
    %4 = arith.mulf %1, %3 : vector<8x128xf32>
    %c1 = arith.constant 1 : index
    %c0_3 = arith.constant 0 : index
    %c0_4 = arith.constant 0 : index
    %5 = vector.load %arg2[%c1, %c0_3, %c0_4] : memref<3x8x128xf32, #tpu.memory_space<vmem>>, vector<1x8x128xf32>
    %6 = vector.shape_cast %5 : vector<1x8x128xf32> to vector<8x128xf32>
    %c1_5 = arith.constant 1 : index
    %7 = memref.load %arg1[%c1_5] : memref<4xf32, #tpu.memory_space<smem>>
    %8 = vector.broadcast %7 : f32 to vector<8x128xf32>
    %9 = arith.mulf %6, %8 : vector<8x128xf32>
    %10 = arith.addf %4, %9 : vector<8x128xf32>
    %c2 = arith.constant 2 : index
    %c0_6 = arith.constant 0 : index
    %c0_7 = arith.constant 0 : index
    %11 = vector.load %arg2[%c2, %c0_6, %c0_7] : memref<3x8x128xf32, #tpu.memory_space<vmem>>, vector<1x8x128xf32>
    %12 = vector.shape_cast %11 : vector<1x8x128xf32> to vector<8x128xf32>
    %c2_8 = arith.constant 2 : index
    %13 = memref.load %arg1[%c2_8] : memref<4xf32, #tpu.memory_space<smem>>
    %14 = vector.broadcast %13 : f32 to vector<8x128xf32>
    %15 = arith.mulf %12, %14 : vector<8x128xf32>
    %16 = arith.addf %10, %15 : vector<8x128xf32>
    %c3 = arith.constant 3 : index
    %17 = memref.load %arg1[%c3] : memref<4xf32, #tpu.memory_space<smem>>
    %18 = vector.broadcast %17 : f32 to vector<8x128xf32>
    %19 = arith.addf %16, %18 : vector<8x128xf32>
    %c0_9 = arith.constant 0 : index
    %c0_10 = arith.constant 0 : index
    %20 = vector.load %arg3[%c0_9, %c0_10] : memref<8x128xf32, #tpu.memory_space<vmem>>, vector<8x128xf32>
    tpu.vector_store %arg3[%c0_9, %c0_10], %19 {strides = array<i32>} : memref<8x128xf32, #tpu.memory_space<vmem>>, vector<8x128xf32>,
    return
  }
  func.func @transform_0(%arg0: i32) -> i32 {
    %c0_i32 = arith.constant 0 : i32
    %c0_i32_0 = arith.constant 0 : i32
    return %c0_i32 : i32
  }
  func.func @transform_1(%arg0: i32) -> (i32, i32, i32) {
    %c0_i32 = arith.constant 0 : i32
    %c0_i32_0 = arith.constant 0 : i32
    %c0_i32_1 = arith.constant 0 : i32
    return %c0_i32, %arg0, %c0_i32_0 : i32, i32, i32
  }
  func.func @transform_2(%arg0: i32) -> (i32, i32) {
    %c0_i32 = arith.constant 0 : i32
    %c0_i32_0 = arith.constant 0 : i32
    return %arg0, %c0_i32 : i32, i32
  }
}

</mosaic_0001>

<bundles_post_ra>
// kernel: multivariable_linear_regression.1
= control target key start
LH: loop header
LB: loop body
LE: loop exit
PB: predicated region body
PF: predicated region fallthrough
CT: control target
= control target key end

     0   :  { %7 = vsyncpa [#allocation3], 0  ;;  %s100_s0 = inlined_call_operand.vmem [shape: f32[4], index: 0, kind: input, shape index: {}]   ;;  %s101_s1 = inlined_call_operand.vmem [shape: f32[3,8,128], index: 1, kind: input, shape index: {}]   ;;  %s102_s2 = inlined_call_operand.vmem [shape: f32[8,128], index: 2, kind: output, shape index: {}]  }
   0x1   :  { %s14_s11 = sshll.u32 %s100_s0, 4  ;;  %s15_s11 = int_to_ptr.vmem [resolvable:$true] %s14_s11 }
   0x2   :  { %s55_s12 = scalar_lea.vmem %s15_s11, 16  ;;  %p60_p1 = scmp.lt.s32.totalorder %s15_s11, %s15_s11 }
   0x3   :  { %p56_p0 = scmp.ne.s32.totalorder %s15_s11, %s55_s12  ;;  %p61_p2 = scmp.lt.s32.totalorder %s55_s12, %s55_s12 }
   0x5   :  { %p62_p3 = por %p61_p2, %p60_p1 }
   0x7   :  { %p63_p4 = pnand %p62_p3, %p56_p0 }
   0x9   :  { %66 = shalt.err (!%p63_p4)
}
   0xa   :  { %s69_s13 = smov [#allocation2]  }
   0xb   :  { %17 = dma.vmem_to_smem %s15_s11, 16, %s69_s13, [#allocation3]  }
   0xc   :  { %67 = dma.done.wait [#allocation3], 16  }
   0xd   :  { %68 = vsyncadd [#allocation3], 4294967280 }
   0xe   :  { %23 = sfence }
   0xf   :  { %s25_s14 = sld [smem:[#allocation2]]  ;;  %v24_v0 = vld [vmem:[%s101_s1] sm:$0xff]  ;;  %v49_v1 = vld [vmem:[%s101_s1 + $0x8] sm:$0xff]  ;;  %v51_v3 = vld [vmem:[%s101_s1 + $0x10] sm:$0xff] }
  0x10   :  { %s50_s15 = sld [smem:[#allocation2 + $0x1]] }
  0x11   :  { %s52_s16 = sld [smem:[#allocation2 + $0x2]] }
  0x12   :  { %s53_s17 = sld [smem:[#allocation2 + $0x3]] }
  0x15   :  { %v26_v2 = vstv %s25_s14 }
  0x16   :  { %v27_v4 = vmul.f32 %v26_v2, %v24_v0  ;;  %v31_v5 = vstv %s50_s15 }
  0x17   :  { %v32_v6 = vmul.f32 %v49_v1, %v31_v5  ;;  %v37_v7 = vstv %s52_s16 }
  0x18   :  { %v38_v8 = vmul.f32 %v51_v3, %v37_v7  ;;  %v41_v10 = vstv %s53_s17 }
  0x19   :  { %v33_v9 = vadd.f32 %v32_v6, %v27_v4 }
  0x1b   :  { %v39_v11 = vadd.f32 %v38_v8, %v33_v9 }
  0x1d   :  { %v42_v12 = vadd.f32 %v41_v10, %v39_v11 }
  0x1f   :  { %43 = vst [vmem:[%s102_s2] sm:$0xff] %v42_v12 }
  0x20   :  { %48 = vsyncpa [#allocation3], 1 }

</bundles_post_ra>
